<compile_context>
chip_gen: v5e
topology: v5e:2x2
jax: 0.10.0
libtpu: 0.0.40
codegen_flags: <defaults>
</compile_context>

<pallas_src>
import functools

import jax
import jax.numpy as jnp
from jax.experimental import pallas as pl
from jax.experimental.pallas import tpu as pltpu


def _balancer_kernel(
    x_ref,            # (TR, C) input tile
    scale_ref,        # (1, C) f32 -- accumulates sum(|x|), finalized to scale_factor
    sign_ref,         # (1, C) f32 -- accumulates sum(x > 0), finalized to sign_factor
    *,
    inv_r: float,         # 1 / true number of rows (unpadded)
    true_rows: int,       # true number of rows (for ragged-tile masking)
    needs_mask: bool,     # whether the last tile overhangs the array
    min_positive: float,
    max_positive: float,
    max_factor: float,
    sign_gain: float,     # sign_gain_factor / prob
    scale_gain: float,    # scale_gain_factor / prob
    min_abs: float,
    max_abs: float,
):
    i = pl.program_id(0)

    # ---- init accumulators (resident (1, C) output blocks) ------------------
    @pl.when(i == 0)
    def _():
        scale_ref[...] = jnp.zeros_like(scale_ref)
        sign_ref[...] = jnp.zeros_like(sign_ref)

    # ---- per-tile partial sums ----------------------------------------------
    x = x_ref[...]                               # (TR, C), native dtype
    x_abs = jnp.abs(x)
    xgt0 = (x > 0).astype(jnp.float32)

    if needs_mask:
        # Ragged last tile: rows beyond true_rows hold undefined data -> mask.
        tr = x.shape[0]
        row_ids = jax.lax.broadcasted_iota(jnp.int32, x.shape, 0) + i * tr
        valid = row_ids < true_rows
        x_abs = jnp.where(valid, x_abs, jnp.zeros_like(x_abs))
        xgt0 = jnp.where(valid, xgt0, jnp.zeros_like(xgt0))

    # Accumulate raw sums in f32 (divide by R once at finalize).
    scale_ref[...] += jnp.sum(x_abs.astype(jnp.float32), axis=0, keepdims=True)
    sign_ref[...] += jnp.sum(xgt0, axis=0, keepdims=True)

    # ---- finalize: apply mean + clamp formulas once, in place ----------------
    @pl.when(i == pl.num_programs(0) - 1)
    def _():
        # _compute_scale_factor
        x_abs_mean = scale_ref[...] * inv_r                      # (1, C) f32
        if min_abs == 0.0:
            below_threshold = jnp.zeros_like(x_abs_mean)
        else:
            below_threshold = jnp.clip(
                (min_abs - x_abs_mean) * (scale_gain / min_abs), 0.0, max_factor
            )
        above_threshold = jnp.clip(
            (x_abs_mean - max_abs) * (scale_gain / max_abs), 0.0, max_factor
        )
        scale_ref[...] = below_threshold - above_threshold

        # _compute_sign_factor
        proportion_positive = sign_ref[...] * inv_r              # (1, C) f32
        if min_positive == 0.0:
            factor1 = jnp.zeros_like(proportion_positive)
        else:
            factor1 = jnp.clip(
                (min_positive - proportion_positive) * (sign_gain / min_positive),
                0.0,
                max_factor,
            )
        if max_positive == 1.0:
            factor2 = jnp.zeros_like(proportion_positive)
        else:
            factor2 = jnp.clip(
                (proportion_positive - max_positive)
                * (sign_gain / (1.0 - max_positive)),
                0.0,
                max_factor,
            )
        sign_ref[...] = factor1 - factor2


def activation_balancer_forward(
    x: jax.Array,
    *,
    num_channels: int,
    channel_dim: int = -1,
    min_positive: float = 0.05,
    max_positive: float = 0.95,
    max_factor: float = 0.04,
    sign_gain_factor: float = 0.01,
    scale_gain_factor: float = 0.02,
    min_abs: float = 0.2,
    max_abs: float = 100.0,
    min_prob: float = 0.1,
    count: int = 0,
    row_tile: int = 512,
):
    """Returns (y, scale_factor, sign_factor).

    y is the ORIGINAL x (identity forward, no HBM copy).
    scale_factor, sign_factor: per-channel float32 vectors of shape (C,),
    i.e. what ActivationBalancerFunction.backward would consume.
    """
    if channel_dim < 0:
        channel_dim += x.ndim
    assert x.shape[channel_dim] == num_channels

    # Deterministic stand-in for the stochastic gating: always active, count=0.
    prob = max(min_prob, 0.5 ** (1 + count / 4000.0))

    # Kernel wants channels on the lane (last) axis.  For the common zipformer
    # case channel_dim == last this reshape is free (no data movement).
    # TODO(synk): for channel_dim != -1 this transpose is an extra HBM pass;
    # could be folded into a 3-D BlockSpec instead.
    if channel_dim != x.ndim - 1:
        perm = [d for d in range(x.ndim) if d != channel_dim] + [channel_dim]
        x_cl = jnp.transpose(x, perm)
    else:
        x_cl = x
    x_2d = x_cl.reshape(-1, num_channels)
    r, c = x_2d.shape

    # Row tiling: tile must be a multiple of 8 (sublane) or equal the full
    # row extent.  Ragged last tile is masked inside the kernel (no padding
    # copy of x, no bias in the means).
    if r <= row_tile:
        tr = r                      # single block equal to full dim -> legal
    else:
        tr = row_tile               # multiple of 8
    grid = (pl.cdiv(r, tr),)
    needs_mask = (r % tr) != 0

    kernel = functools.partial(
        _balancer_kernel,
        inv_r=1.0 / float(r),
        true_rows=r,
        needs_mask=needs_mask,
        min_positive=min_positive,
        max_positive=max_positive,
        max_factor=max_factor,
        sign_gain=sign_gain_factor / prob,
        scale_gain=scale_gain_factor / prob,
        min_abs=min_abs,
        max_abs=max_abs,
    )

    scale_2d, sign_2d = pl.pallas_call(
        kernel,
        out_shape=(
            jax.ShapeDtypeStruct((1, c), jnp.float32),
            jax.ShapeDtypeStruct((1, c), jnp.float32),
        ),
        grid_spec=pltpu.PrefetchScalarGridSpec(
            num_scalar_prefetch=0,
            grid=grid,
            in_specs=[pl.BlockSpec((tr, c), lambda i: (i, 0))],
            out_specs=[
                pl.BlockSpec((1, c), lambda i: (0, 0)),   # resident accumulator
                pl.BlockSpec((1, c), lambda i: (0, 0)),   # resident accumulator
            ],
        ),
        compiler_params=pltpu.CompilerParams(
            dimension_semantics=("arbitrary",)   # reduction over rows
        ),
    )(x_2d)

    # Identity forward: return the original x, no kernel writeback.
    return x, scale_2d[0], sign_2d[0]


def _reference(x, **kw):
    """Pure-JAX reference for the factor computation (sanity checking)."""
    channel_dim = kw.get("channel_dim", -1)
    if channel_dim < 0:
        channel_dim += x.ndim
    sum_dims = tuple(d for d in range(x.ndim) if d != channel_dim)
    prob = max(kw["min_prob"], 0.5 ** (1 + kw["count"] / 4000.0))
    xf = x.astype(jnp.float32)
    x_abs_mean = jnp.mean(jnp.abs(xf), axis=sum_dims)
    scale_gain = kw["scale_gain_factor"] / prob
    below = (jnp.clip((kw["min_abs"] - x_abs_mean) * (scale_gain / kw["min_abs"]),
                      0.0, kw["max_factor"]) if kw["min_abs"] != 0.0 else 0.0)
    above = jnp.clip((x_abs_mean - kw["max_abs"]) * (scale_gain / kw["max_abs"]),
                     0.0, kw["max_factor"])
    scale_factor = below - above
    prop_pos = jnp.mean((xf > 0).astype(jnp.float32), axis=sum_dims)
    sign_gain = kw["sign_gain_factor"] / prob
    f1 = (jnp.clip((kw["min_positive"] - prop_pos) * (sign_gain / kw["min_positive"]),
                   0.0, kw["max_factor"]) if kw["min_positive"] != 0.0 else 0.0)
    f2 = (jnp.clip((prop_pos - kw["max_positive"]) * (sign_gain / (1.0 - kw["max_positive"])),
                   0.0, kw["max_factor"]) if kw["max_positive"] != 1.0 else 0.0)
    sign_factor = f1 - f2
    return x, scale_factor, sign_factor


if __name__ == "__main__":
    key = jax.random.PRNGKey(0)
    base_params = dict(
        channel_dim=-1,
        min_positive=0.05,
        max_positive=0.95,
        max_factor=0.04,
        sign_gain_factor=0.01,
        scale_gain_factor=0.02,
        min_abs=0.2,
        max_abs=100.0,
        min_prob=0.1,
        count=0,
    )

    # Test 1: small zipformer-like shape (single tile path).
    B, T, C = 2, 16, 32
    k1, k2 = jax.random.split(key)
    x1 = jax.random.normal(k1, (B, T, C), dtype=jnp.float32) * 0.5
    p1 = dict(num_channels=C, **base_params)
    y1, sc1, sg1 = activation_balancer_forward(x1, **p1)
    jax.block_until_ready((y1, sc1, sg1))
    y1_ref, sc1_ref, sg1_ref = _reference(x1, **p1)
    assert jnp.array_equal(y1, x1), "identity output mismatch (test 1)"
    assert jnp.allclose(sc1, sc1_ref, atol=1e-6), "scale_factor mismatch (test 1)"
    assert jnp.allclose(sg1, sg1_ref, atol=1e-6), "sign_factor mismatch (test 1)"

    # Test 2: larger shape exercising row tiling + ragged-last-tile masking
    # (R = 3*200 = 600 rows -> grid of 2 tiles of 512, last tile masked).
    B2, T2, C2 = 3, 200, 256
    x2 = jax.random.normal(k2, (B2, T2, C2), dtype=jnp.float32) * 0.3
    p2 = dict(num_channels=C2, **base_params)
    y2, sc2, sg2 = activation_balancer_forward(x2, **p2)
    jax.block_until_ready((y2, sc2, sg2))
    y2_ref, sc2_ref, sg2_ref = _reference(x2, **p2)
    assert jnp.array_equal(y2, x2), "identity output mismatch (test 2)"
    assert jnp.allclose(sc2, sc2_ref, atol=1e-5), "scale_factor mismatch (test 2)"
    assert jnp.allclose(sg2, sg2_ref, atol=1e-5), "sign_factor mismatch (test 2)"

    print("KERNEL_OK")
</pallas_src>

<mosaic_0001>
module attributes {stable_mosaic.version = 11 : i64} {
  func.func @_balancer_kernel(%arg0: i32, %arg1: memref<32x32xf32, #tpu.memory_space<vmem>>, %arg2: memref<1x32xf32, #tpu.memory_space<vmem>>, %arg3: memref<1x32xf32, #tpu.memory_space<vmem>>) attributes {dimension_semantics = [#tpu.dimension_semantics<arbitrary>], iteration_bounds = array<i64: 1>, scalar_prefetch = 0 : i64, scratch_operands = 0 : i64, tpu.core_type = #tpu.core_type<tc>, window_params = [{transform_indices = @transform_0, window_bounds = array<i64: 32, 32>}, {pipeline_mode = #tpu.pipeline_mode<synchronous>, transform_indices = @transform_1, window_bounds = array<i64: 1, 32>}, {pipeline_mode = #tpu.pipeline_mode<synchronous>, transform_indices = @transform_2, window_bounds = array<i64: 1, 32>}]} {
    %c0_i32 = arith.constant 0 : i32
    %0 = arith.cmpi eq, %arg0, %c0_i32 : i32
    %1 = arith.extui %0 : i1 to i32
    %c0_i32_0 = arith.constant 0 : i32
    %2 = arith.cmpi ne, %1, %c0_i32_0 : i32
    scf.if %2 {
      %cst_14 = arith.constant 0.000000e+00 : f32
      %22 = vector.broadcast %cst_14 : f32 to vector<1x32xf32>
      %c0_15 = arith.constant 0 : index
      %c0_16 = arith.constant 0 : index
      %23 = vector.load %arg2[%c0_15, %c0_16] : memref<1x32xf32, #tpu.memory_space<vmem>>, vector<1x32xf32>
      tpu.vector_store %arg2[%c0_15, %c0_16], %22 {strides = array<i32>} : memref<1x32xf32, #tpu.memory_space<vmem>>, vector<1x32xf32>,
      %cst_17 = arith.constant 0.000000e+00 : f32
      %24 = vector.broadcast %cst_17 : f32 to vector<1x32xf32>
      %c0_18 = arith.constant 0 : index
      %c0_19 = arith.constant 0 : index
      %25 = vector.load %arg3[%c0_18, %c0_19] : memref<1x32xf32, #tpu.memory_space<vmem>>, vector<1x32xf32>
      tpu.vector_store %arg3[%c0_18, %c0_19], %24 {strides = array<i32>} : memref<1x32xf32, #tpu.memory_space<vmem>>, vector<1x32xf32>,
    } else {
    }
    %c0 = arith.constant 0 : index
    %c0_1 = arith.constant 0 : index
    %3 = vector.load %arg1[%c0, %c0_1] : memref<32x32xf32, #tpu.memory_space<vmem>>, vector<32x32xf32>
    %4 = math.absf %3 : vector<32x32xf32>
    %cst = arith.constant 0.000000e+00 : f32
    %5 = vector.broadcast %cst : f32 to vector<32x32xf32>
    %6 = arith.cmpf ogt, %3, %5 : vector<32x32xf32>
    %7 = arith.extui %6 : vector<32x32xi1> to vector<32x32xi32>
    %8 = arith.sitofp %7 : vector<32x32xi32> to vector<32x32xf32>
    %c0_2 = arith.constant 0 : index
    %c0_3 = arith.constant 0 : index
    %9 = vector.load %arg2[%c0_2, %c0_3] : memref<1x32xf32, #tpu.memory_space<vmem>>, vector<1x32xf32>
    %cst_4 = arith.constant dense<0.000000e+00> : vector<32xf32>
    %10 = vector.multi_reduction <add>, %4, %cst_4 [0] : vector<32x32xf32> to vector<32xf32>
    %11 = vector.shape_cast %10 : vector<32xf32> to vector<1x32xf32>
    %12 = arith.addf %9, %11 : vector<1x32xf32>
    %c0_5 = arith.constant 0 : index
    %c0_6 = arith.constant 0 : index
    %13 = vector.load %arg2[%c0_5, %c0_6] : memref<1x32xf32, #tpu.memory_space<vmem>>, vector<1x32xf32>
    tpu.vector_store %arg2[%c0_5, %c0_6], %12 {strides = array<i32>} : memref<1x32xf32, #tpu.memory_space<vmem>>, vector<1x32xf32>,
    %c0_7 = arith.constant 0 : index
    %c0_8 = arith.constant 0 : index
    %14 = vector.load %arg3[%c0_7, %c0_8] : memref<1x32xf32, #tpu.memory_space<vmem>>, vector<1x32xf32>
    %cst_9 = arith.constant dense<0.000000e+00> : vector<32xf32>
    %15 = vector.multi_reduction <add>, %8, %cst_9 [0] : vector<32x32xf32> to vector<32xf32>
    %16 = vector.shape_cast %15 : vector<32xf32> to vector<1x32xf32>
    %17 = arith.addf %14, %16 : vector<1x32xf32>
    %c0_10 = arith.constant 0 : index
    %c0_11 = arith.constant 0 : index
    %18 = vector.load %arg3[%c0_10, %c0_11] : memref<1x32xf32, #tpu.memory_space<vmem>>, vector<1x32xf32>
    tpu.vector_store %arg3[%c0_10, %c0_11], %17 {strides = array<i32>} : memref<1x32xf32, #tpu.memory_space<vmem>>, vector<1x32xf32>,
    %c0_i32_12 = arith.constant 0 : i32
    %19 = arith.cmpi eq, %arg0, %c0_i32_12 : i32
    %20 = arith.extui %19 : i1 to i32
    %c0_i32_13 = arith.constant 0 : i32
    %21 = arith.cmpi ne, %20, %c0_i32_13 : i32
    scf.if %21 {
      %c0_14 = arith.constant 0 : index
      %c0_15 = arith.constant 0 : index
      %22 = vector.load %arg2[%c0_14, %c0_15] : memref<1x32xf32, #tpu.memory_space<vmem>>, vector<1x32xf32>
      %cst_16 = arith.constant 3.125000e-02 : f32
      %23 = vector.broadcast %cst_16 : f32 to vector<1x32xf32>
      %24 = arith.mulf %22, %23 : vector<1x32xf32>
      %cst_17 = arith.constant 2.000000e-01 : f32
      %25 = vector.broadcast %cst_17 : f32 to vector<1x32xf32>
      %26 = arith.subf %25, %24 : vector<1x32xf32>
      %cst_18 = arith.constant 2.000000e-01 : f32
      %27 = vector.broadcast %cst_18 : f32 to vector<1x32xf32>
      %28 = arith.mulf %26, %27 : vector<1x32xf32>
      %cst_19 = arith.constant 0.000000e+00 : f32
      %cst_20 = arith.constant 4.000000e-02 : f32
      %29 = vector.broadcast %cst_19 : f32 to vector<1x32xf32>
      %30 = arith.maximumf %29, %28 : vector<1x32xf32>
      %31 = vector.broadcast %cst_20 : f32 to vector<1x32xf32>
      %32 = arith.minimumf %31, %30 : vector<1x32xf32>
      %cst_21 = arith.constant 1.000000e+02 : f32
      %33 = vector.broadcast %cst_21 : f32 to vector<1x32xf32>
      %34 = arith.subf %24, %33 : vector<1x32xf32>
      %cst_22 = arith.constant 4.000000e-04 : f32
      %35 = vector.broadcast %cst_22 : f32 to vector<1x32xf32>
      %36 = arith.mulf %34, %35 : vector<1x32xf32>
      %cst_23 = arith.constant 0.000000e+00 : f32
      %cst_24 = arith.constant 4.000000e-02 : f32
      %37 = vector.broadcast %cst_23 : f32 to vector<1x32xf32>
      %38 = arith.maximumf %37, %36 : vector<1x32xf32>
      %39 = vector.broadcast %cst_24 : f32 to vector<1x32xf32>
      %40 = arith.minimumf %39, %38 : vector<1x32xf32>
      %41 = arith.subf %32, %40 : vector<1x32xf32>
      %c0_25 = arith.constant 0 : index
      %c0_26 = arith.constant 0 : index
      %42 = vector.load %arg2[%c0_25, %c0_26] : memref<1x32xf32, #tpu.memory_space<vmem>>, vector<1x32xf32>
      tpu.vector_store %arg2[%c0_25, %c0_26], %41 {strides = array<i32>} : memref<1x32xf32, #tpu.memory_space<vmem>>, vector<1x32xf32>,
      %c0_27 = arith.constant 0 : index
      %c0_28 = arith.constant 0 : index
      %43 = vector.load %arg3[%c0_27, %c0_28] : memref<1x32xf32, #tpu.memory_space<vmem>>, vector<1x32xf32>
      %cst_29 = arith.constant 3.125000e-02 : f32
      %44 = vector.broadcast %cst_29 : f32 to vector<1x32xf32>
      %45 = arith.mulf %43, %44 : vector<1x32xf32>
      %cst_30 = arith.constant 5.000000e-02 : f32
      %46 = vector.broadcast %cst_30 : f32 to vector<1x32xf32>
      %47 = arith.subf %46, %45 : vector<1x32xf32>
      %cst_31 = arith.constant 4.000000e-01 : f32
      %48 = vector.broadcast %cst_31 : f32 to vector<1x32xf32>
      %49 = arith.mulf %47, %48 : vector<1x32xf32>
      %cst_32 = arith.constant 0.000000e+00 : f32
      %cst_33 = arith.constant 4.000000e-02 : f32
      %50 = vector.broadcast %cst_32 : f32 to vector<1x32xf32>
      %51 = arith.maximumf %50, %49 : vector<1x32xf32>
      %52 = vector.broadcast %cst_33 : f32 to vector<1x32xf32>
      %53 = arith.minimumf %52, %51 : vector<1x32xf32>
      %cst_34 = arith.constant 0.949999988 : f32
      %54 = vector.broadcast %cst_34 : f32 to vector<1x32xf32>
      %55 = arith.subf %45, %54 : vector<1x32xf32>
      %cst_35 = arith.constant 4.000000e-01 : f32
      %56 = vector.broadcast %cst_35 : f32 to vector<1x32xf32>
      %57 = arith.mulf %55, %56 : vector<1x32xf32>
      %cst_36 = arith.constant 0.000000e+00 : f32
      %cst_37 = arith.constant 4.000000e-02 : f32
      %58 = vector.broadcast %cst_36 : f32 to vector<1x32xf32>
      %59 = arith.maximumf %58, %57 : vector<1x32xf32>
      %60 = vector.broadcast %cst_37 : f32 to vector<1x32xf32>
      %61 = arith.minimumf %60, %59 : vector<1x32xf32>
      %62 = arith.subf %53, %61 : vector<1x32xf32>
      %c0_38 = arith.constant 0 : index
      %c0_39 = arith.constant 0 : index
      %63 = vector.load %arg3[%c0_38, %c0_39] : memref<1x32xf32, #tpu.memory_space<vmem>>, vector<1x32xf32>
      tpu.vector_store %arg3[%c0_38, %c0_39], %62 {strides = array<i32>} : memref<1x32xf32, #tpu.memory_space<vmem>>, vector<1x32xf32>,
    } else {
    }
    return
  }
  func.func @transform_0(%arg0: i32) -> (i32, i32) {
    %c0_i32 = arith.constant 0 : i32
    %c0_i32_0 = arith.constant 0 : i32
    return %arg0, %c0_i32 : i32, i32
  }
  func.func @transform_1(%arg0: i32) -> (i32, i32) {
    %c0_i32 = arith.constant 0 : i32
    %c0_i32_0 = arith.constant 0 : i32
    %c0_i32_1 = arith.constant 0 : i32
    return %c0_i32, %c0_i32_0 : i32, i32
  }
  func.func @transform_2(%arg0: i32) -> (i32, i32) {
    %c0_i32 = arith.constant 0 : i32
    %c0_i32_0 = arith.constant 0 : i32
    %c0_i32_1 = arith.constant 0 : i32
    return %c0_i32, %c0_i32_0 : i32, i32
  }
}

</mosaic_0001>

<bundles_post_ra>
// kernel: tpu_custom_call.1
= control target key start
LH: loop header
LB: loop body
LE: loop exit
PB: predicated region body
PF: predicated region fallthrough
CT: control target
= control target key end

     0   :  { %8 = vsyncpa [#allocation3], 0  ;;  %s283_s0 = inlined_call_operand.hbm [shape: f32[32,32], index: 0, kind: input, shape index: {}]   ;;  %s284_s1 = inlined_call_operand.hbm [shape: f32[1,32], index: 1, kind: output, shape index: {0}]   ;;  %s285_s2 = inlined_call_operand.hbm [shape: f32[1,32], index: 2, kind: output, shape index: {1}]  }
   0x1   :  { %9 = vsyncpa [#allocation4], 0 }
   0x2   :  { %10 = vsyncpa [#allocation7], 0  ;;  %s15_s11 = sshll.u32 %s283_s0, 4  ;;  %s239_s12 = smov [#allocation2]   ;;  %s16_s11 = int_to_ptr.hbm [resolvable:$true] %s15_s11 }
   0x3   :  { %s17_s13 = sshll.u32 %s239_s12, 4  ;;  %s240_s14 = smov 128   ;;  %s18_s13 = int_to_ptr.vmem [resolvable:$true] %s17_s13 }
   0x4   :  { %s241_s15 = smov 8  }
   0x5   :  { %23 = dma.hbm_to_vmem [thread:$0]  %s16_s11, 512, %s18_s13, [#allocation3], %s240_s14, %s240_s14, %s241_s15  }
   0x6   :  { %233 = dma.done.wait [#allocation3], 512  }
   0x7   :  { %234 = vsyncadd [#allocation3], 4294966784  ;;  %vm32_vm0 = vcmask 253952   ;;  %v242_v0 = vmov 0.0   ;;  %v35_v1 = vld [vmem:[#allocation2] sm:$0xff]  ;;  %v36_v2 = vld [vmem:[#allocation2 + $0x8] sm:$0xff] }
   0x8   :  { %33 = vst.msk [vmem:[#allocation5] sm:$0x1] %vm32_vm0, %v242_v0  ;;  %v37_v3 = vld [vmem:[#allocation2 + $0x10] sm:$0xff]  ;;  %vm56_vm1 = vcmask 261120   ;;  %v38_v4 = vld [vmem:[#allocation2 + $0x18] sm:$0xff]  ;;  %vm43_vm2 = vcmp.gt.f32.partialorder %v35_v1, 0.0 }
   0x9   :  { %34 = vst.msk [vmem:[#allocation6] sm:$0x1] %vm32_vm0, %v242_v0  ;;  %v39_v5 = vand.u32 2147483647, %v35_v1  ;;  %v40_v6 = vand.u32 2147483647, %v36_v2 }
   0xa   :  { %v41_v7 = vand.u32 2147483647, %v37_v3  ;;  %vm44_vm3 = vcmp.gt.f32.partialorder %v36_v2, 0.0  ;;  %vm45_vm4 = vcmp.gt.f32.partialorder %v37_v3, 0.0  ;;  %vm46_vm5 = vcmp.gt.f32.partialorder %v38_v4, 0.0  ;;  %s243_s0 = smov [#allocation6]  }
   0xb   :  { %v149_v8 = vsel %vm43_vm2, 1.0, %v242_v0  ;;  %v150_v9 = vsel %vm44_vm3, 1.0, %v242_v0  ;;  %v151_v10 = vsel %vm45_vm4, 1.0, %v242_v0  ;;  %v152_v11 = vsel %vm46_vm5, 1.0, %v242_v0  ;;  %s132_s16 = sshll.u32 %s243_s0, 4  ;;  %s134_s19 = sshll.u32 %s285_s2, 4  ;;  %s133_s16 = int_to_ptr.vmem [resolvable:$true] %s132_s16  ;;  %s135_s19 = int_to_ptr.hbm [resolvable:$true] %s134_s19 }
   0xc   :  { %v74_v12 = vsel %vm56_vm1, %v149_v8, 0.0  ;;  %v75_v13 = vsel %vm56_vm1, %v150_v9, 0.0  ;;  %v77_v14 = vsel %vm56_vm1, %v151_v10, 0.0  ;;  %v42_v15 = vand.u32 2147483647, %v38_v4  ;;  %s244_s20 = smov [#allocation5]  }
   0xd   :  { %v76_v16 = vadd.f32 %v75_v13, %v74_v12  ;;  %v57_v17 = vsel %vm56_vm1, %v39_v5, 0.0  ;;  %v58_v18 = vsel %vm56_vm1, %v40_v6, 0.0  ;;  %v60_v19 = vsel %vm56_vm1, %v41_v7, 0.0  ;;  %s121_s21 = sshll.u32 %s244_s20, 4  ;;  %s123_s24 = sshll.u32 %s284_s1, 4  ;;  %s122_s21 = int_to_ptr.vmem [resolvable:$true] %s121_s21  ;;  %s124_s24 = int_to_ptr.hbm [resolvable:$true] %s123_s24 }
   0xe   :  { %v59_v20 = vadd.f32 %v58_v18, %v57_v17  ;;  %v79_v21 = vsel %vm56_vm1, %v152_v11, 0.0  ;;  %v62_v22 = vsel %vm56_vm1, %v42_v15, 0.0 }
   0xf   :  { %v78_v23 = vadd.f32 %v77_v14, %v76_v16  ;;  %v55_v38 = vld [vmem:[#allocation5] sm:$0x1] }
  0x10   :  { %v61_v24 = vadd.f32 %v60_v19, %v59_v20  ;;  %v73_v37 = vld [vmem:[#allocation6] sm:$0x1] }
  0x11   :  { %v80_v25 = vadd.f32 %v79_v21, %v78_v23 }
  0x12   :  { %v63_v26 = vadd.f32 %v62_v22, %v61_v24 }
  0x13   :  { %v81_v27 = vrot.slane %v80_v25, 4 }
  0x14   :  { %v64_v28 = vrot.slane %v63_v26, 4 }
  0x15   :  { %v82_v29 = vadd.f32 %v81_v27, %v80_v25 }
  0x16   :  { %v65_v30 = vadd.f32 %v64_v28, %v63_v26 }
  0x17   :  { %v83_v31 = vrot.slane %v82_v29, 2 }
  0x18   :  { %v66_v32 = vrot.slane %v65_v30, 2 }
  0x19   :  { %v84_v33 = vadd.f32 %v83_v31, %v82_v29 }
  0x1a   :  { %v67_v34 = vadd.f32 %v66_v32, %v65_v30 }
  0x1b   :  { %v85_v35 = vrot.slane %v84_v33, 1 }
  0x1c   :  { %v68_v36 = vrot.slane %v67_v34, 1 }
  0x1d   :  { %v86_v39 = vadd.f32 %v85_v35, %v84_v33 }
  0x1e   :  { %v69_v40 = vadd.f32 %v68_v36, %v67_v34 }
  0x1f   :  { %v87_v41 = vadd.f32 %v86_v39, %v73_v37 }
  0x20   :  { %v70_v42 = vadd.f32 %v69_v40, %v55_v38 }
  0x21   :  { %88 = vst.msk [vmem:[#allocation6] sm:$0x1] %vm32_vm0, %v87_v41 }
  0x22   :  { %72 = vst.msk [vmem:[#allocation5] sm:$0x1] %vm32_vm0, %v70_v42 }
  0x28   :  { %v104_v43 = vld [vmem:[#allocation6] sm:$0x1] }
  0x29   :  { %v92_v44 = vld [vmem:[#allocation5] sm:$0x1]  ;;  %v105_v45 = vmul.f32 0.03125, %v104_v43 }
  0x2a   :  { %v93_v46 = vmul.f32 0.03125, %v92_v44 }
  0x2b   :  { %v106_v47 = vsub.f32 0.05, %v105_v45  ;;  %v154_v48 = vadd.f32 -0.95, %v105_v45 }
  0x2c   :  { %v94_v49 = vsub.f32 0.2, %v93_v46  ;;  %v153_v50 = vadd.f32 -100.0, %v93_v46 }
  0x2d   :  { %v107_v51 = vmul.f32 0.4, %v106_v47  ;;  %v111_v52 = vmul.f32 0.4, %v154_v48 }
  0x2e   :  { %v95_v53 = vmul.f32 0.2, %v94_v49  ;;  %v99_v54 = vmul.f32 0.0004, %v153_v50 }
  0x2f   :  { %v108_v55 = vmax.f32 %v107_v51, 0.0  ;;  %v112_v56 = vmax.f32 %v111_v52, 0.0 }
  0x30   :  { %v96_v57 = vmax.f32 %v95_v53, 0.0  ;;  %v100_v58 = vmax.f32 %v99_v54, 0.0 }
  0x31   :  { %v109_v59 = vmin.f32 %v108_v55, 0.04  ;;  %v113_v60 = vmin.f32 %v112_v56, 0.04 }
  0x32   :  { %v97_v61 = vmin.f32 %v96_v57, 0.04  ;;  %v101_v62 = vmin.f32 %v100_v58, 0.04 }
  0x33   :  { %v114_v63 = vsub.f32 %v109_v59, %v113_v60 }
  0x34   :  { %v102_v0 = vsub.f32 %v97_v61, %v101_v62 }
  0x35   :  { %115 = vst.msk [vmem:[#allocation6] sm:$0x1] %vm32_vm0, %v114_v63 }
  0x36   :  { %103 = vst.msk [vmem:[#allocation5] sm:$0x1] %vm32_vm0, %v102_v0  ;;  %137 = dma.vmem_to_hbm [thread:$0]  %s133_s16, 16, %s135_s19, [#allocation7]  }
  0x37   :  { %126 = dma.vmem_to_hbm [thread:$0]  %s122_s21, 16, %s124_s24, [#allocation4]  }
  0x38   :  { %235 = dma.done.wait [#allocation4], 16  }
  0x39   :  { %236 = vsyncadd [#allocation4], 4294967280 }
  0x3a   :  { %237 = dma.done.wait [#allocation7], 16  }
  0x3b   :  { %238 = vsyncadd [#allocation7], 4294967280 }
  0x3c   :  { %146 = vsyncpa [#allocation3], 1 }
  0x3d   :  { %147 = vsyncpa [#allocation4], 1 }
  0x3e   :  { %148 = vsyncpa [#allocation7], 1 }

</bundles_post_ra>
